<compile_context>
chip_gen: v7x
topology: tpu7x:2x2x1
jax: 0.10.0
libtpu: 0.0.40
codegen_flags: <defaults>
</compile_context>

<pallas_src>
import jax
import jax.numpy as jnp
from jax import lax
from jax.experimental import pallas as pl
from jax.experimental.pallas import tpu as pltpu


def self_attention_kernel(gamma_ref, xf_ref, xq_ref, mt_ref, wb_ref,
                          wv_ref, bv_ref, o_ref):
    x = xf_ref[0]                                    # (C, N)  f32: key/value side (full rows)
    xq = xq_ref[0]                                   # (C, TQ) f32: query tile
    x_bf = x.astype(jnp.bfloat16)
    xq_bf = xq.astype(jnp.bfloat16)

    # Augmented value projection: rows 0..C-1 are v = Wv X + bv, row C is all
    # ones (0 @ X + 1) -- used below to get the softmax row sums out of the
    # same MXU matmul for free.
    v_aug = jnp.dot(wv_ref[...], x_bf,
                    preferred_element_type=jnp.float32) + bv_ref[...]      # (C+1, N)

    # Folded q/k projections (bq/bk terms constant per softmax row drop out):
    #   g      = M^T Xq + (Wk^T bq)                 (C, TQ)
    #   energy = g^T X  == Xq^T (Wq^T Wk) X + bias  (TQ, N)   [trans-A matmul]
    g = jnp.dot(mt_ref[...], xq_bf,
                preferred_element_type=jnp.float32) + wb_ref[...]          # (C, TQ)
    energy = lax.dot_general(g.astype(jnp.bfloat16), x_bf,
                             (((0,), (0,)), ((), ())),
                             preferred_element_type=jnp.float32)           # (TQ, N)

    # Exact row softmax; normalization deferred past the AV matmul.
    m_row = jnp.max(energy, axis=-1, keepdims=True)                        # (TQ, 1)
    p_bf = jnp.exp(energy - m_row).astype(jnp.bfloat16)                    # (TQ, N)

    # out_aug[c, i] = sum_j v_aug[c, j] * p[i, j]  (contract last axes of both
    # operands -> no .T copy).  Last row = row sums l[i].
    out_aug = lax.dot_general(v_aug.astype(jnp.bfloat16), p_bf,
                              (((1,), (1,)), ((), ())),
                              preferred_element_type=jnp.float32)          # (C+1, TQ)

    inv = pl.reciprocal(out_aug[-1:, :], approx=True)                      # (1, TQ)
    out = out_aug[:-1, :] * inv                                            # (C, TQ)

    o_ref[0] = (gamma_ref[0] * out + xq).astype(o_ref.dtype)


def _pick_tq(n):
    # 256 fits comfortably on all generations (v7x has 64 MiB VMEM); pass
    # tq=512 explicitly on v6e for larger tiles.  Small demo maps (N < 128)
    # use the full row count (can't be lane-tiled below 128 anyway).
    for tq in (256, 128):
        if n % tq == 0:
            return tq
    return n


def self_attention(x_nchw, params, *, tq=None):
    bs, C, H, W = x_nchw.shape
    N = H * W
    x = x_nchw.reshape(bs, C, N)                     # free view, no HBM transpose

    if tq is None:
        tq = _pick_tq(N)
    assert N % tq == 0, "query-tile size must divide H*W"
    nq = N // tq

    wq, wk, wv = params["wq"], params["wk"], params["wv"]
    bq, bv = params["bq"], params["bv"]

    # Tiny wrapper-side param prep.
    mt = (wk.T @ wq).astype(jnp.bfloat16)            # (C, C)   = (Wq^T Wk)^T
    wb_col = (wk.T @ bq).reshape(C, 1)               # (C, 1)   = Wk^T bq, f32
    wv_aug = jnp.concatenate(                        # (C+1, C) = [Wv; 0], bf16
        [wv, jnp.zeros((1, C), wv.dtype)], axis=0).astype(jnp.bfloat16)
    bv_aug = jnp.concatenate(                        # (C+1, 1) = [bv; 1], f32
        [bv, jnp.ones((1,), bv.dtype)], axis=0).reshape(C + 1, 1)

    out = pl.pallas_call(
        self_attention_kernel,
        out_shape=jax.ShapeDtypeStruct((bs, C, N), x.dtype),
        grid=(bs, nq),
        in_specs=[
            pl.BlockSpec(memory_space=pltpu.MemorySpace.SMEM),     # gamma scalar
            pl.BlockSpec((1, C, N), lambda b, q: (b, 0, 0)),       # x: full K/V slab
            pl.BlockSpec((1, C, tq), lambda b, q: (b, 0, q)),      # x: query tile
            pl.BlockSpec((C, C), lambda b, q: (0, 0)),             # M^T
            pl.BlockSpec((C, 1), lambda b, q: (0, 0)),             # Wk^T bq
            pl.BlockSpec((C + 1, C), lambda b, q: (0, 0)),         # Wv augmented
            pl.BlockSpec((C + 1, 1), lambda b, q: (0, 0)),         # bv augmented
        ],
        out_specs=pl.BlockSpec((1, C, tq), lambda b, q: (b, 0, q)),
        compiler_params=pltpu.CompilerParams(
            dimension_semantics=("parallel", "parallel"),
            vmem_limit_bytes=48 * 1024 * 1024),
    )(params["gamma"], x, x, mt, wb_col, wv_aug, bv_aug)

    return out.reshape(bs, C, H, W)


def self_attention_reference(x_nchw, params):
    """Pure-JAX f32 reference mirroring the PyTorch forward exactly."""
    bs, C, H, W = x_nchw.shape
    N = H * W
    x = x_nchw.reshape(bs, C, N)
    q = jnp.einsum("oc,bcn->bon", params["wq"], x) + params["bq"][None, :, None]
    k = jnp.einsum("oc,bcn->bon", params["wk"], x) + params["bk"][None, :, None]
    v = jnp.einsum("oc,bcn->bon", params["wv"], x) + params["bv"][None, :, None]
    energy = jnp.einsum("boi,boj->bij", q, k)
    attn = jax.nn.softmax(energy, axis=-1)
    out = jnp.einsum("bcj,bij->bci", v, attn)
    out = params["gamma"][0] * out + x
    return out.reshape(bs, C, H, W)


if __name__ == "__main__":
    bs, C, H, W = 2, 32, 8, 8           # in_dim = 32 -> q/k channels = 4
    C8 = C // 8

    key = jax.random.PRNGKey(0)
    ks = jax.random.split(key, 8)
    x = jax.random.normal(ks[0], (bs, C, H, W), jnp.float32)

    # Conv-layout parameters: W[out, in] for the 1x1 convs, biases per out-chan.
    params = {
        "wq": jax.random.normal(ks[1], (C8, C), jnp.float32) * 0.1,
        "bq": jax.random.normal(ks[2], (C8,), jnp.float32) * 0.1,
        "wk": jax.random.normal(ks[3], (C8, C), jnp.float32) * 0.1,
        "bk": jax.random.normal(ks[4], (C8,), jnp.float32) * 0.1,
        "wv": jax.random.normal(ks[5], (C, C), jnp.float32) * 0.1,
        "bv": jax.random.normal(ks[6], (C,), jnp.float32) * 0.1,
        "gamma": jnp.zeros((1,), jnp.float32),   # matches nn.Parameter(torch.zeros(1))
    }

    out = jax.block_until_ready(self_attention(x, params))
    ref = self_attention_reference(x, params)
    assert out.shape == (bs, C, H, W)
    # gamma == 0 -> output is exactly the residual input.
    assert jnp.allclose(out, ref, atol=1e-6, rtol=1e-6)

    # Non-trivial path (gamma != 0): bf16 MXU operands + folded q/k projections,
    # so compare against the pure-f32 reference with a bf16-level tolerance.
    params_nz = dict(params, gamma=jnp.array([0.7], jnp.float32))
    out_nz = jax.block_until_ready(self_attention(x, params_nz))
    ref_nz = self_attention_reference(x, params_nz)
    assert jnp.allclose(out_nz, ref_nz, atol=2e-2, rtol=2e-2)

    print("KERNEL_OK")
</pallas_src>

<mosaic_0001>
module attributes {stable_mosaic.version = 11 : i64} {
  func.func @self_attention_kernel(%arg0: i32, %arg1: i32, %arg2: memref<1xf32, #tpu.memory_space<smem>>, %arg3: memref<1x32x64xf32, #tpu.memory_space<vmem>>, %arg4: memref<1x32x64xf32, #tpu.memory_space<vmem>>, %arg5: memref<32x32xbf16, #tpu.memory_space<vmem>>, %arg6: memref<32x1xf32, #tpu.memory_space<vmem>>, %arg7: memref<33x32xbf16, #tpu.memory_space<vmem>>, %arg8: memref<33x1xf32, #tpu.memory_space<vmem>>, %arg9: memref<1x32x64xf32, #tpu.memory_space<vmem>>) attributes {dimension_semantics = [#tpu.dimension_semantics<parallel>, #tpu.dimension_semantics<parallel>], iteration_bounds = array<i64: 2, 1>, scalar_prefetch = 0 : i64, scratch_operands = 0 : i64, tpu.core_type = #tpu.core_type<tc>, window_params = [{transform_indices = @transform_0, window_bounds = array<i64: 1>}, {transform_indices = @transform_1, window_bounds = array<i64: 1, 32, 64>}, {transform_indices = @transform_2, window_bounds = array<i64: 1, 32, 64>}, {pipeline_mode = #tpu.pipeline_mode<synchronous>, transform_indices = @transform_3, window_bounds = array<i64: 32, 32>}, {pipeline_mode = #tpu.pipeline_mode<synchronous>, transform_indices = @transform_4, window_bounds = array<i64: 32, 1>}, {pipeline_mode = #tpu.pipeline_mode<synchronous>, transform_indices = @transform_5, window_bounds = array<i64: 33, 32>}, {pipeline_mode = #tpu.pipeline_mode<synchronous>, transform_indices = @transform_6, window_bounds = array<i64: 33, 1>}, {transform_indices = @transform_7, window_bounds = array<i64: 1, 32, 64>}]} {
    %c0 = arith.constant 0 : index
    %c0_0 = arith.constant 0 : index
    %c0_1 = arith.constant 0 : index
    %0 = vector.load %arg3[%c0, %c0_0, %c0_1] : memref<1x32x64xf32, #tpu.memory_space<vmem>>, vector<1x32x64xf32>
    %1 = vector.shape_cast %0 : vector<1x32x64xf32> to vector<32x64xf32>
    %c0_2 = arith.constant 0 : index
    %c0_3 = arith.constant 0 : index
    %c0_4 = arith.constant 0 : index
    %2 = vector.load %arg4[%c0_2, %c0_3, %c0_4] : memref<1x32x64xf32, #tpu.memory_space<vmem>>, vector<1x32x64xf32>
    %3 = vector.shape_cast %2 : vector<1x32x64xf32> to vector<32x64xf32>
    %4 = arith.truncf %1 : vector<32x64xf32> to vector<32x64xbf16>
    %5 = arith.truncf %3 : vector<32x64xf32> to vector<32x64xbf16>
    %c0_5 = arith.constant 0 : index
    %c0_6 = arith.constant 0 : index
    %6 = vector.load %arg7[%c0_5, %c0_6] : memref<33x32xbf16, #tpu.memory_space<vmem>>, vector<33x32xbf16>
    %cst = arith.constant dense<0.000000e+00> : vector<33x64xf32>
    %7 = tpu.matmul %6, %4, %cst {dimension_numbers = #tpu.dot_dimension_numbers<[1], [0], [0], [1], [0, 0, 1, 1], [], []>} : vector<33x32xbf16>, vector<32x64xbf16>, vector<33x64xf32> -> vector<33x64xf32>
    %c0_7 = arith.constant 0 : index
    %c0_8 = arith.constant 0 : index
    %8 = vector.load %arg8[%c0_7, %c0_8] : memref<33x1xf32, #tpu.memory_space<vmem>>, vector<33x1xf32>
    %9 = vector.broadcast %8 : vector<33x1xf32> to vector<33x64xf32>
    %10 = arith.addf %7, %9 : vector<33x64xf32>
    %c0_9 = arith.constant 0 : index
    %c0_10 = arith.constant 0 : index
    %11 = vector.load %arg5[%c0_9, %c0_10] : memref<32x32xbf16, #tpu.memory_space<vmem>>, vector<32x32xbf16>
    %cst_11 = arith.constant dense<0.000000e+00> : vector<32x64xf32>
    %12 = tpu.matmul %11, %5, %cst_11 {dimension_numbers = #tpu.dot_dimension_numbers<[1], [0], [0], [1], [0, 0, 1, 1], [], []>} : vector<32x32xbf16>, vector<32x64xbf16>, vector<32x64xf32> -> vector<32x64xf32>
    %c0_12 = arith.constant 0 : index
    %c0_13 = arith.constant 0 : index
    %13 = vector.load %arg6[%c0_12, %c0_13] : memref<32x1xf32, #tpu.memory_space<vmem>>, vector<32x1xf32>
    %14 = vector.broadcast %13 : vector<32x1xf32> to vector<32x64xf32>
    %15 = arith.addf %12, %14 : vector<32x64xf32>
    %16 = arith.truncf %15 : vector<32x64xf32> to vector<32x64xbf16>
    %cst_14 = arith.constant dense<0.000000e+00> : vector<64x64xf32>
    %17 = tpu.matmul %16, %4, %cst_14 {dimension_numbers = #tpu.dot_dimension_numbers<[0], [0], [1], [1], [0, 1, 1, 1], [], []>} : vector<32x64xbf16>, vector<32x64xbf16>, vector<64x64xf32> -> vector<64x64xf32>
    %cst_15 = arith.constant dense<0xFF800000> : vector<64xf32>
    %18 = vector.multi_reduction <maximumf>, %17, %cst_15 [1] : vector<64x64xf32> to vector<64xf32>
    %19 = vector.shape_cast %18 : vector<64xf32> to vector<64x1xf32>
    %20 = vector.broadcast %19 : vector<64x1xf32> to vector<64x64xf32>
    %21 = arith.subf %17, %20 : vector<64x64xf32>
    %22 = math.exp %21 : vector<64x64xf32>
    %23 = arith.truncf %22 : vector<64x64xf32> to vector<64x64xbf16>
    %24 = arith.truncf %10 : vector<33x64xf32> to vector<33x64xbf16>
    %cst_16 = arith.constant dense<0.000000e+00> : vector<33x64xf32>
    %25 = tpu.matmul %24, %23, %cst_16 {dimension_numbers = #tpu.dot_dimension_numbers<[1], [1], [0], [0], [0, 0, 1, 0], [], []>} : vector<33x64xbf16>, vector<64x64xbf16>, vector<33x64xf32> -> vector<33x64xf32>
    %26 = vector.extract_strided_slice %25 {offsets = [32, 0], sizes = [1, 64], strides = [1, 1]} : vector<33x64xf32> to vector<1x64xf32>
    %27 = tpu.reciprocal %26 {approx = true} : vector<1x64xf32> -> vector<1x64xf32>
    %28 = vector.extract_strided_slice %25 {offsets = [0, 0], sizes = [32, 64], strides = [1, 1]} : vector<33x64xf32> to vector<32x64xf32>
    %29 = vector.broadcast %27 : vector<1x64xf32> to vector<32x64xf32>
    %30 = arith.mulf %28, %29 : vector<32x64xf32>
    %c0_17 = arith.constant 0 : index
    %31 = memref.load %arg2[%c0_17] : memref<1xf32, #tpu.memory_space<smem>>
    %32 = vector.broadcast %31 : f32 to vector<32x64xf32>
    %33 = arith.mulf %32, %30 : vector<32x64xf32>
    %34 = arith.addf %33, %3 : vector<32x64xf32>
    %c0_18 = arith.constant 0 : index
    %c0_19 = arith.constant 0 : index
    %c0_20 = arith.constant 0 : index
    %35 = vector.load %arg9[%c0_18, %c0_19, %c0_20] : memref<1x32x64xf32, #tpu.memory_space<vmem>>, vector<1x32x64xf32>
    %36 = vector.shape_cast %35 : vector<1x32x64xf32> to vector<32x64xf32>
    %37 = vector.shape_cast %34 : vector<32x64xf32> to vector<1x32x64xf32>
    tpu.vector_store %arg9[%c0_18, %c0_19, %c0_20], %37 {strides = array<i32>} : memref<1x32x64xf32, #tpu.memory_space<vmem>>, vector<1x32x64xf32>,
    return
  }
  func.func @transform_0(%arg0: i32, %arg1: i32) -> i32 {
    %c0_i32 = arith.constant 0 : i32
    %c0_i32_0 = arith.constant 0 : i32
    return %c0_i32 : i32
  }
  func.func @transform_1(%arg0: i32, %arg1: i32) -> (i32, i32, i32) {
    %c0_i32 = arith.constant 0 : i32
    %c0_i32_0 = arith.constant 0 : i32
    %c0_i32_1 = arith.constant 0 : i32
    return %arg0, %c0_i32, %c0_i32_0 : i32, i32, i32
  }
  func.func @transform_2(%arg0: i32, %arg1: i32) -> (i32, i32, i32) {
    %c0_i32 = arith.constant 0 : i32
    %c0_i32_0 = arith.constant 0 : i32
    return %arg0, %c0_i32, %arg1 : i32, i32, i32
  }
  func.func @transform_3(%arg0: i32, %arg1: i32) -> (i32, i32) {
    %c0_i32 = arith.constant 0 : i32
    %c0_i32_0 = arith.constant 0 : i32
    %c0_i32_1 = arith.constant 0 : i32
    return %c0_i32, %c0_i32_0 : i32, i32
  }
  func.func @transform_4(%arg0: i32, %arg1: i32) -> (i32, i32) {
    %c0_i32 = arith.constant 0 : i32
    %c0_i32_0 = arith.constant 0 : i32
    %c0_i32_1 = arith.constant 0 : i32
    return %c0_i32, %c0_i32_0 : i32, i32
  }
  func.func @transform_5(%arg0: i32, %arg1: i32) -> (i32, i32) {
    %c0_i32 = arith.constant 0 : i32
    %c0_i32_0 = arith.constant 0 : i32
    %c0_i32_1 = arith.constant 0 : i32
    return %c0_i32, %c0_i32_0 : i32, i32
  }
  func.func @transform_6(%arg0: i32, %arg1: i32) -> (i32, i32) {
    %c0_i32 = arith.constant 0 : i32
    %c0_i32_0 = arith.constant 0 : i32
    %c0_i32_1 = arith.constant 0 : i32
    return %c0_i32, %c0_i32_0 : i32, i32
  }
  func.func @transform_7(%arg0: i32, %arg1: i32) -> (i32, i32, i32) {
    %c0_i32 = arith.constant 0 : i32
    %c0_i32_0 = arith.constant 0 : i32
    return %arg0, %c0_i32, %arg1 : i32, i32, i32
  }
}

</mosaic_0001>

<bundles_post_ra>
// kernel: tpu_custom_call.1
= control target key start
LH: loop header
LB: loop body
LE: loop exit
PB: predicated region body
PF: predicated region fallthrough
CT: control target
= control target key end

     0   :  { %s1596_s0 = inlined_call_operand.<no memory space> [shape: f32[1], index: 0, kind: input, shape index: {}]   ;;  %s1597_s1 = inlined_call_operand.vmem [shape: f32[2,32,64], index: 1, kind: input, shape index: {}]   ;;  %s1598_s2 = inlined_call_operand.hbm [shape: f32[2,32,64], index: 2, kind: input, shape index: {}]   ;;  %s1599_s3 = inlined_call_operand.vmem [shape: bf16[32,32], index: 3, kind: input, shape index: {}]   ;;  %s1600_s4 = inlined_call_operand.vmem [shape: f32[32,1], index: 4, kind: input, shape index: {}]   ;;  %s1601_s5 = inlined_call_operand.vmem [shape: bf16[33,32], index: 5, kind: input, shape index: {}]   ;;  %s1602_s6 = inlined_call_operand.vmem [shape: f32[33,1], index: 6, kind: input, shape index: {}]   ;;  %s1603_s7 = inlined_call_operand.hbm [shape: f32[2,32,64], index: 7, kind: output, shape index: {}]  }
   0x1   :  { %12 = sst [smem:[#allocation2]] %s1596_s0 }
   0x2   :  { %13 = vsyncpa [#allocation4], 0 }
   0x3   :  { %15 = vsyncpa [#allocation4 + $0x1], 0 }
   0x4   :  { %16 = vsyncpa [#allocation5], 0 }
   0x5   :  { %18 = vsyncpa [#allocation5 + $0x1], 0  ;;  %s1293_s26 = smov 0   ;;  %s1295_s27 = smov 0  }
   0x6   :  { %s1297_s28 = smov 0   ;;  %s1299_s29 = smov 0  }
   0x7   :  { %s1301_s30 = smov 0   ;;  %s1303_s8 = smov 0  }
   0x8 LB: > { %s918_s0 = sadd.s32 4294967295, %s1239_s8   ;;  %s919_s9 = sadd.s32 4294967294, %s1239_s8   ;;  %s1239_s8 = sphi %s1303_s8, %s24_s8   ;;  %s1235_s30 = sphi %s1301_s30, %s1618_s30   ;;  %s1231_s29 = sphi %s1299_s29, %s1617_s29   ;;  %s1227_s28 = sphi %s1297_s28, %s1616_s28   ;;  %s1223_s27 = sphi %s1295_s27, %s1615_s27   ;;  %s1219_s26 = sphi %s1293_s26, %s1614_s26  }
   0x9   : > { %s36_s10 = sadd.s32 1, %s1235_s30  ;;  %s92_s11 = sadd.s32 1, %s1227_s28 }
   0xa   : > { %p38_p0 = scmp.ge.s32.totalorder %s36_s10, 2  ;;  %p99_p1 = scmp.ne.s32.totalorder %s1227_s28, %s1223_s27 }
   0xb   : > { %p100_p2 = scmp.eq.s32.totalorder %s1239_s8, 0  ;;  %p105_p3 = scmp.ne.s32.totalorder %s1223_s27, %s1219_s26 }
   0xc   : > { %s1620_s10 = smov (%p38_p0, %s36_s10), 0  ;;  %p106_p5 = scmp.eq.s32.totalorder %s918_s0, 0 }
   0xd   : > { %p1334_p4 = por %p100_p2, %p99_p1  ;;  %s87_s13 = ssub.s32 %s1235_s30, %s1620_s10 }
   0xe   : > { %p215_p6 = scmp.eq.s32.totalorder %s918_s0, 1  ;;  %p90_p7 = scmp.eq.s32.totalorder %s87_s13, 0 }
   0xf   : > { %p1340_p8 = por %p106_p5, %p105_p3  ;;  %p221_p10 = scmp.eq.s32.totalorder %s919_s9, 1 }
  0x10   : > { %p1344_p9 = por %p215_p6, %p99_p1  ;;  %p1045_p13 = scmp.lt.s32.totalorder %s1239_s8, 2 }
  0x11   : > { %s1349_s16 = scalar_select %p90_p7, %s1227_s28, %s92_s11  }
  0x12   : > { %s1607_s15 = scalar_select %p1344_p9, 1, 0 }
  0x13   : > { %p1351_p11 = por %p221_p10, %p105_p3  ;;  %s264_s18 = sand.u32 1, %s1227_s28  }
  0x14   : > { %s922_s19 = sshll.u32 %s264_s18, 5  ;;  %s952_s20 = sshll.u32 %s1235_s30, 9 }
  0x15   : > { %s1608_s17 = scalar_select %p1351_p11, 1, 0 }
  0x16   : > { %s1362_s23 = scalar_lea.hbm %s1598_s2, %s952_s20  ;;  %s268_s24 = scalar_lea.vmem [#allocation3], %s922_s19 }
  0x17   : > { %s276_s25 = sshll.u32 %s268_s24, 4  ;;  %p1368_p0 = pnand %p1045_p13, %p1334_p4  ;;  %s1364_s25 = int_to_ptr.vmem [resolvable:$true] %s276_s25 }
  0x18   : > { %s1373_s9 = scalar_lea.sflag [#allocation4], %s264_s18  ;;  %s1127_s11 = scalar_lea.hbm %s1362_s23, 512 }
  0x19   : > { %p1128_p2 = scmp.ne.s32.totalorder %s1362_s23, %s1127_s11  ;;  %p1129_p3 = pneg %p1368_p0 }
  0x1a   : > { %s1132_s12 = scalar_lea.hbm %s1598_s2, 1024  ;;  %p1133_p4 = scmp.lt.u32.totalorder %s1362_s23, %s1598_s2 }
  0x1b   : > { %p1130_p5 = pnand %p1129_p3, %p1128_p2  ;;  %p1134_p7 = scmp.lt.u32.totalorder %s1132_s12, %s1127_s11 }
  0x1c   : > { %p1136_p13 = scmp.lt.u32.totalorder %s1127_s11, %s1362_s23 }
  0x1d   : > { %p1131_p6 = pneg %p1130_p5  ;;  %p1135_p10 = por %p1134_p7, %p1133_p4 }
  0x1f   : > { %p1137_p12 = por %p1136_p13, %p1135_p10 }
  0x21   : > { %p1138_p1 = pnand %p1137_p12, %p1131_p6 }
  0x23   : > { %1141 = shalt.err (!%p1138_p1)
}
  0x24   : > { %s1142_s18 = scalar_lea.vmem %s1364_s25, 512  ;;  %s1241_s22 = smov [#allocation3]  }
  0x25   : > { %p1143_p2 = scmp.ne.s32.totalorder %s1364_s25, %s1142_s18  ;;  %s1147_s24 = sshll.u32 %s1241_s22, 4  ;;  %s1148_s24 = int_to_ptr.vmem [resolvable:$false] %s1147_s24 }
  0x26   : > { %s1149_s13 = scalar_lea.vmem %s1148_s24, 1024  ;;  %p1150_p9 = scmp.lt.s32.totalorder %s1364_s25, %s1148_s24 }
  0x27   : > { %p1145_p5 = pnand %p1143_p2, %p1129_p3  ;;  %p1151_p4 = scmp.lt.s32.totalorder %s1149_s13, %s1142_s18 }
  0x29   : > { %p1146_p11 = pneg %p1145_p5  ;;  %p1152_p7 = por %p1151_p4, %p1150_p9 }
  0x2b   : > { %p1153_p10 = pnand %p1152_p7, %p1146_p11 }
  0x2d   : > { %1156 = shalt.err (!%p1153_p10)
}
  0x2e   : > { %s1242_s11 = smov 128   ;;  %s1243_s19 = smov 8  }
  0x2f   : > { %1040 = dma.hbm_to_vmem [thread:$0]  (!%p1368_p0), %s1362_s23, 512, %s1364_s25, %s1373_s9, %s1242_s11, %s1242_s11, %s1243_s19  }
  0x30   : > { %p284_p12 = scmp.lt.s32.totalorder %s1239_s8, 3  ;;  %p1610_p1 = scmp.ge.s32.totalorder %s1239_s8, 1 }
  0x32   : > { %p285_p3 = pnand %p1610_p1, %p284_p12 }
  0x33   : > { %s1405_s12 = sand.u32 (!%p285_p3), 1, %s1223_s27  }
  0x34   : > { %288 = sbr.rel (%p285_p3) target bundleno = 1098 (0x44a), region = 48  ;;  %s926_s20 = sshll.u32 (!%p285_p3), %s1405_s12, 5 }
  0x35   : > { %s291_s21 = scalar_lea.sflag (!%p285_p3), [#allocation4], %s1405_s12  ;;  %s294_s18 = scalar_lea.vmem (!%p285_p3), [#allocation3], %s926_s20 }
  0x3b   : > { %1210 = dma.done.wait (%p1340_p8), %s291_s21, 512  }
  0x3c   : > { %1212 = vsyncadd (%p1340_p8), %s291_s21, 4294966784  ;;  %p330_p9 = scmp.lt.s32.totalorder %s1231_s29, 1  ;;  %v1244_v0 = vmov 0.0   ;;  %vm1245_vm0 = vmmov 0   ;;  %v1246_v1 = vmov 0   ;;  %v1426_v7 = vld [vmem:[%s294_s18] sm:$0xff] }
  0x3d   : > { %977 = vmatprep.subr.bf16.mxu1 %v1244_v0  ;;  %981 = vmatprep.mubr.msk.bf16.mxu1 %vm1245_vm0, %v1244_v0  ;;  %v1428_v8 = vld [vmem:[%s294_s18 + $0x8] sm:$0xff]  ;;  %v1104_v10 = vld [vmem:[%s1601_s5] sm:$0xff]   ;;  %v1436_v12 = vld [vmem:[%s294_s18 + $0x10] sm:$0xff]  ;;  %vm396_vm1 = vcmask 261120   ;;  %vm650_vm2 = vcmask 523264   ;;  %s792_s19 = sld [smem:[#allocation2]] }
  0x3e   : > { %s331_s23 = scalar_select %p330_p9, %s1231_s29, 1  ;;  %1102 = vset.pattern.permute.xlu0 %v1246_v1  ;;  %1103 = vset.pattern.permute.xlu1 %v1246_v1  ;;  %v346_v11 = vpack.c.bf16 %v1428_v8, %v1426_v7  ;;  %v1438_v13 = vld [vmem:[%s294_s18 + $0x18] sm:$0xff]  ;;  %v466_v14 = vld [vmem:[%s1600_s4] sm:$0xff]  ;;  %v468_v15 = vld [vmem:[%s1600_s4 + $0x10] sm:$0xff] }
  0x3f   : > { %1013 = vmatprep.subr.bf16.mxu0 %v1244_v0  ;;  %1021 = vmatprep.mubr.msk.bf16.mxu0 %vm1245_vm0, %v1244_v0  ;;  %v347_v16 = vpack.c.bf16 %v1438_v13, %v1436_v12  ;;  %v467_v17 = vld [vmem:[%s1600_s4 + $0x8] sm:$0xff]  ;;  %v469_v18 = vld [vmem:[%s1600_s4 + $0x18] sm:$0xff]  ;;  %v1106_v20 = vld [vmem:[%s1601_s5 + $0x10] ss:$0 sps:$4 sm:$0x11]   ;;  %s954_s21 = sshll.u32 %s1231_s29, 9 }
  0x40   : > { %s953_s14 = sshll.u32 %s331_s23, 5  ;;  %472 = vperm.xlu0 %1102, %v466_v14   ;;  %482 = vperm.xlu1 %1103, %v468_v15   ;;  %v1105_v19 = vld [vmem:[%s1601_s5 + $0x8] sm:$0xff]   ;;  %v1107_v21 = vld [vmem:[%s1599_s3] sm:$0xff]   ;;  %v356_v14 = vld [vmem:[%s1602_s6 + $0x18] sm:$0xff]  ;;  %s329_s23 = scalar_lea.vmem [#allocation6], %s926_s20 }
  0x41   : > { %s334_s9 = scalar_lea.vmem %s1597_s1, %s953_s14  ;;  %v1108_v22 = vld [vmem:[%s1599_s3 + $0x8] sm:$0xff]   ;;  %s821_s14 = sshll.u32 %s329_s23, 4  ;;  %s1539_s14 = int_to_ptr.vmem [resolvable:$true] %s821_s14 }
  0x42   : > { %v336_v2 = vld [vmem:[%s334_s9] sm:$0xff]  ;;  %v337_v3 = vld [vmem:[%s334_s9 + $0x8] sm:$0xff]  ;;  %v338_v4 = vld [vmem:[%s334_s9 + $0x10] sm:$0xff]  ;;  %s1537_s0 = scalar_lea.hbm %s1603_s7, %s954_s21  ;;  %s807_s29 = scalar_lea.sflag [#allocation5], %s1405_s12 }
  0x43   : > { %v344_v5 = vpack.c.bf16 %v337_v3, %v336_v2  ;;  %v339_v6 = vld [vmem:[%s334_s9 + $0x18] sm:$0xff]  ;;  %s1157_s20 = scalar_lea.vmem %s1539_s14, 512  ;;  %p1611_p11 = scmp.ne.s32.totalorder %s1607_s15, 0 }
  0x44   : > { %v345_v9 = vpack.c.bf16 %v339_v6, %v338_v4  ;;  %477 = vperm.xlu0 %1102, %v467_v17   ;;  %487 = vperm.xlu1 %1103, %v469_v18   ;;  %v354_v6 = vld [vmem:[%s1602_s6 + $0x8] sm:$0xff]  ;;  %p1158_p8 = scmp.ne.s32.totalorder %s1539_s14, %s1157_s20  ;;  %s1247_s9 = smov [#allocation6]  }
  0x45   : > { %978 = vmatpush3.bf16.msra.mxu1 %v344_v5  ;;  %s1161_s22 = sshll.u32 %s1247_s9, 4  ;;  %s1162_s22 = int_to_ptr.vmem [resolvable:$false] %s1161_s22 }
  0x46   : > { %979 = vmatprep.subr.bf16.mxu1 %v1244_v0  ;;  %p1159_p0 = pnand %p1158_p8, %p1611_p11  ;;  %s1163_s24 = scalar_lea.vmem %s1162_s22, 1024 }
  0x47   : > { %p1164_p13 = scmp.lt.s32.totalorder %s1539_s14, %s1162_s22  ;;  %p1165_p2 = scmp.lt.s32.totalorder %s1163_s24, %s1157_s20 }
  0x48   : > { %p1160_p6 = pneg %p1159_p0 }
  0x49   : > { %980 = vmatpush3.bf16.msra.mxu1 %v345_v9  ;;  %p1166_p5 = por %p1165_p2, %p1164_p13 }
  0x4a   : > { %993 = vmatprep.subr.bf16.mxu1 %v346_v11 }
  0x4b   : > { %p1167_p4 = pnand %p1166_p5, %p1160_p6 }
  0x4c   : > { %982 = vmatmul.mubr.msk.bf16.vlgmr.msra.gmra.mrb[0].mxu1 %vm396_vm1, %v1104_v10  ;;  %v353_v10 = vld [vmem:[%s1602_s6] sm:$0xff] }
  0x4d   : > { %994 = vmatpush3.bf16.msra.mxu1 %v346_v11  ;;  %985 = vmatprep.mubr.msk.bf16.mxu1 %vm1245_vm0, %v1244_v0  ;;  %v355_v11 = vld [vmem:[%s1602_s6 + $0x10] sm:$0xff] }
  0x4e   : > { %995 = vmatprep.subr.bf16.mxu1 %v347_v16 }
  0x51   : > { %996 = vmatpush3.bf16.msra.mxu1 %v347_v16 }
  0x52   : > { %1001 = vmatprep.subr.bf16.mxu1 %v344_v5 }
  0x54   : > { %986 = vmatmul.mubr.msk.bf16.gmra.mrb[4].mxu1 %vm396_vm1, %v1105_v19 }
  0x55   : > { %989 = vmatprep.mubr.msk.bf16.mxu1 %vm1245_vm0, %v1244_v0 }
  0x5c   : > { %990 = vmatmul.mubr.msk.bf16.gmra.mrb[8].mxu1 %vm396_vm1, %v1106_v20 }
  0x5d   : > { %997 = vmatprep.mubr.msk.bf16.mxu1 %vm396_vm1, %v1107_v21 }
  0x64   : > { %998 = vmatmul.mubr.msk.bf16.vlgmr.msra.gmra.mrb[12].mxu1 %vm396_vm1, %v1108_v22 }
  0x65   : > { %1002 = vmatpush3.bf16.msra.mxu1 %v344_v5 }
  0x66   : > { %1003 = vmatprep.subr.bf16.mxu1 %v345_v9 }
  0x69   : > { %1004 = vmatpush3.bf16.msra.mxu1 %v345_v9  ;;  %v357_v9 = vld [vmem:[%s1602_s6 + $0x20] sm:$0x1] }
  0xbf   : > { %v483_v34 = vpop.permute.xlu1 %482  ;;  %v473_v36 = vpop.permute.xlu0 %472 }
  0xc3   : > { %v488_v38 = vpop.permute.xlu1 %487  ;;  %v478_v41 = vpop.permute.xlu0 %477 }
 0x11f   : > { %v1475_v23 = vpop.f32.mrb[0].mxu1 }
 0x120   : > { %v983_v24 = vpop.f32.mrb[1].mxu1 }
 0x121   : > { %v1477_v25 = vpop.f32.mrb[2].mxu1 }
 0x122   : > { %v984_v26 = vpop.f32.mrb[3].mxu1 }
 0x127   : > { %v1479_v27 = vpop.f32.mrb[4].mxu1 }
 0x128   : > { %v987_v28 = vpop.f32.mrb[5].mxu1 }
 0x129   : > { %v1481_v29 = vpop.f32.mrb[6].mxu1 }
 0x12a   : > { %v988_v30 = vpop.f32.mrb[7].mxu1 }
 0x12f   : > { %v1483_v31 = vpop.f32.mrb[8].mxu1 }
 0x130   : > { %v991_v32 = vpop.f32.mrb[9].mxu1 }
 0x131   : > { %v459_v33 = vpop.f32.mrb[10].mxu1 }
 0x132   : > { %v992_v35 = vpop.f32.mrb[11].mxu1 }
 0x137   : > { %v999_v37 = vpop.f32.mrb[12].mxu1 }
 0x138   : > { %v540_v39 = vpop.f32.mrb[13].mxu1  ;;  %v549_v42 = vadd.f32 %v999_v37, %v483_v34 }
 0x139   : > { %v1000_v40 = vpop.f32.mrb[14].mxu1  ;;  %v541_v45 = vadd.f32 %v540_v39, %v473_v36 }
 0x13a   : > { %v552_v43 = vadd.f32 %v1000_v40, %v488_v38  ;;  %v543_v44 = vpop.f32.mrb[15].mxu1 }
 0x13b   : > { %v544_v46 = vadd.f32 %v543_v44, %v478_v41 }
 0x13c   : > { %v556_v47 = vpack.c.bf16 %v552_v43, %v549_v42 }
 0x13d   : > { %v555_v48 = vpack.c.bf16 %v544_v46, %v541_v45 }
 0x13f   : > { %557 = vxpose.xlu0.c.b16.start [1/2] (short) (narrow) %v555_v48, 64 }
 0x143   : > { %558 = vxpose.xlu0.c.b16.end [2/2] (short) (narrow) %v556_v47, 64 }
 0x1a5   : > { %v565_v49 = vpop.trf.xlu0 }
 0x1a6   : > { %1005 = vmatprep.mubr.msk.bf16.mxu1 %vm396_vm1, %v565_v49 }
 0x1a9   : > { %v566_v50 = vpop.trf.xlu0 }
 0x1aa   : > { %1006 = vmatmul.mubr.msk.bf16.vlgmr.msra.gmra.mrb[16].mxu1 %vm396_vm1, %v566_v50 }
 0x1ad   : > { %v567_v51 = vpop.trf.xlu0 }
 0x1ae   : > { %1009 = vmatprep.mubr.msk.bf16.mxu1 %vm396_vm1, %v567_v51 }
 0x1b1   : > { %v568_v52 = vpop.trf.xlu0 }
 0x1b2   : > { %1010 = vmatmul.mubr.msk.bf16.gmra.mrb[20].mxu1 %vm396_vm1, %v568_v52 }
 0x27d   : > { %v1007_v53 = vpop.f32.mrb[16].mxu1 }
 0x27e   : > { %v619_v54 = vpop.f32.mrb[17].mxu1  ;;  %v657_v59 = vsel %vm650_vm2, %v1007_v53, -inf }
 0x27f   : > { %v1008_v55 = vpop.f32.mrb[18].mxu1  ;;  %v651_v56 = vsel %vm650_vm2, %v619_v54, -inf }
 0x280   : > { %652 = vmax.xlane.f32.xlu1 %v651_v56  ;;  %v622_v57 = vpop.f32.mrb[19].mxu1  ;;  %v660_v63 = vsel %vm650_vm2, %v1008_v55, -inf }
 0x281   : > { %v654_v58 = vsel %vm650_vm2, %v622_v57, -inf }
 0x282   : > { %655 = vmax.xlane.f32.xlu0 %v654_v58 }
 0x284   : > { %658 = vmax.xlane.f32.xlu1 %v657_v59 }
 0x285   : > { %v1011_v60 = vpop.f32.mrb[20].mxu1 }
 0x286   : > { %v635_v61 = vpop.f32.mrb[21].mxu1  ;;  %v669_v3 = vsel %vm650_vm2, %v1011_v60, -inf }
 0x287   : > { %v1012_v62 = vpop.f32.mrb[22].mxu1  ;;  %v663_v4 = vsel %vm650_vm2, %v635_v61, -inf }
 0x288   : > { %661 = vmax.xlane.f32.xlu1 %v660_v63  ;;  %v672_v1 = vsel %vm650_vm2, %v1012_v62, -inf  ;;  %v638_v2 = vpop.f32.mrb[23].mxu1 }
 0x289   : > { %673 = vmax.xlane.f32.xlu0 %v672_v1  ;;  %v666_v5 = vsel %vm650_vm2, %v638_v2, -inf }
 0x28c   : > { %670 = vmax.xlane.f32.xlu1 %v669_v3 }
 0x290   : > { %664 = vmax.xlane.f32.xlu1 %v663_v4 }
 0x294   : > { %667 = vmax.xlane.f32.xlu1 %v666_v5 }
 0x29f   : > { %365 = vperm.xlu0 %1102, %v354_v6  }
 0x2a3   : > { %380 = vperm.xlu0 %1102, %v357_v9  }
 0x2a5   : > { %360 = vperm.xlu1 %1103, %v353_v10  }
 0x2a9   : > { %370 = vperm.xlu1 %1103, %v355_v11  }
 0x2ad   : > { %375 = vperm.xlu1 %1103, %v356_v14  }
 0x30d   : > { %v653_v15 = vpop.xlane.xlu1 %652 }
 0x30e   : > { %v675_v16 = vsub.f32 %v619_v54, %v653_v15 }
 0x30f   : > { %v656_v17 = vpop.xlane.xlu0 %655 }
 0x310   : > { %v683_v18 = vmul.f32 1.442695, %v675_v16  ;;  %v676_v19 = vsub.f32 %v622_v57, %v656_v17 }
 0x311   : > { %v659_v20 = vpop.xlane.xlu1 %658 }
 0x312   : > { %v685_v21 = vmul.f32 1.442695, %v676_v19  ;;  %v677_v22 = vsub.f32 %v1007_v53, %v659_v20  ;;  %1109 = vpow2.f32 %v683_v18  ;;  %v784_v19 = vlaneseq }
 0x314   : > { %1111 = vpow2.f32 %v685_v21  ;;  %v687_v24 = vmul.f32 1.442695, %v677_v22 }
 0x315   : > { %v662_v26 = vpop.xlane.xlu1 %661 }
 0x316   : > { %v678_v28 = vsub.f32 %v1008_v55, %v662_v26  ;;  %v674_v30 = vpop.xlane.xlu0 %673  ;;  %1113 = vpow2.f32 %v687_v24 }
 0x317   : > { %v682_v32 = vsub.f32 %v1012_v62, %v674_v30 }
 0x318   : > { %v689_v33 = vmul.f32 1.442695, %v678_v28  ;;  %v793_v28 = vstv %s792_s19 }
 0x319   : > { %v697_v34 = vmul.f32 1.442695, %v682_v32  ;;  %v671_v35 = vpop.xlane.xlu1 %670 }
 0x31a   : > { %1115 = vpow2.f32 %v689_v33  ;;  %v681_v36 = vsub.f32 %v1011_v60, %v671_v35 }
 0x31b   : > { %1117 = vpow2.f32 %v697_v34 }
 0x31c   : > { %v695_v37 = vmul.f32 1.442695, %v681_v36  ;;  %v1110_v38 = vpop.eup %1109 }
 0x31d   : > { %v665_v39 = vpop.xlane.xlu1 %664 }
 0x31e   : > { %v1112_v40 = vpop.eup %1111  ;;  %1119 = vpow2.f32 %v695_v37  ;;  %v679_v41 = vsub.f32 %v635_v61, %v665_v39  ;;  %v366_v48 = vpop.permute.xlu0 %365 }
 0x31f   : > { %v699_v42 = vpack.c.bf16 %v1112_v40, %v1110_v38  ;;  %v444_v53 = vadd.f32 %v1477_v25, %v366_v48 }
 0x320   : > { %v691_v43 = vmul.f32 1.442695, %v679_v41  ;;  %v1114_v47 = vpop.eup %1113 }
 0x321   : > { %v668_v44 = vpop.xlane.xlu1 %667  ;;  %v716_v45 = vsel %vm650_vm2, %v699_v42, 0 }
 0x322   : > { %v680_v46 = vsub.f32 %v638_v2, %v668_v44  ;;  %1014 = vmatpush3.bf16.xpose.msra.mxu0 %v716_v45  ;;  %1121 = vpow2.f32 %v691_v43 }
 0x323   : > { %1015 = vmatprep.subr.bf16.mxu0 %v1244_v0 }
 0x324   : > { %v1116_v49 = vpop.eup %1115  ;;  %v693_v50 = vmul.f32 1.442695, %v680_v46 }
 0x325   : > { %v361_v51 = vpop.permute.xlu1 %360  ;;  %v700_v52 = vpack.c.bf16 %v1116_v49, %v1114_v47  ;;  %v1118_v55 = vpop.eup %1117 }
 0x326   : > { %1123 = vpow2.f32 %v693_v50  ;;  %v441_v54 = vadd.f32 %v1475_v23, %v361_v51 }
 0x327   : > { %v719_v59 = vsel %vm650_vm2, %v700_v52, 0 }
 0x328   : > { %v1120_v56 = vpop.eup %1119  ;;  %v703_v57 = vpack.c.bf16 %v444_v53, %v441_v54 }
 0x329   : > { %v371_v58 = vpop.permute.xlu1 %370  ;;  %v702_v60 = vpack.c.bf16 %v1118_v55, %v1120_v56 }
 0x32a   : > { %1016 = vmatpush3.bf16.xpose.msra.mxu0 %v719_v59  ;;  %v449_v62 = vadd.f32 %v1479_v27, %v371_v58  ;;  %v381_v27 = vpop.permute.xlu0 %380 }
 0x32b   : > { %1017 = vmatprep.subr.bf16.mxu0 %v1244_v0  ;;  %v725_v4 = vsel %vm650_vm2, %v702_v60, 0 }
 0x32c   : > { %v1122_v1 = vpop.eup %1121 }
 0x32d   : > { %v376_v61 = vpop.permute.xlu1 %375 }
 0x32e   : > { %v452_v63 = vadd.f32 %v1481_v29, %v376_v61  ;;  %v457_v29 = vadd.f32 %v1483_v31, %v381_v27  ;;  %v785_v31 = vshrl.u32 %v784_v19, 7 }
 0x330   : > { %v1124_v25 = vpop.eup %1123  ;;  %v704_v2 = vpack.c.bf16 %v452_v63, %v449_v62  ;;  %v705_v5 = vpack.c.bf16 %v457_v29, %v457_v29  ;;  %v786_v22 = vsub.s32 0, %v785_v31 }
 0x331   : > { %v701_v3 = vpack.c.bf16 %v1124_v25, %v1122_v1 }
 0x333   : > { %v722_v23 = vsel %vm650_vm2, %v701_v3, 0 }
 0x334   : > { %1018 = vmatpush3.bf16.xpose.msra.mxu0 %v722_v23 }
 0x335   : > { %1019 = vmatprep.subr.bf16.mxu0 %v1244_v0 }
 0x33c   : > { %1020 = vmatpush3.bf16.xpose.msra.mxu0 %v725_v4 }
 0x343   : > { %1022 = vmatmul.mubr.msk.bf16.vlgmr.msra.gmra.mrb[0].mxu0 %vm650_vm2, %v703_v57 }
 0x344   : > { %1025 = vmatprep.mubr.msk.bf16.mxu0 %vm1245_vm0, %v1244_v0 }
 0x34b   : > { %1026 = vmatmul.mubr.msk.bf16.gmra.mrb[4].mxu0 %vm650_vm2, %v704_v2 }
 0x34c   : > { %1029 = vmatprep.mubr.msk.bf16.mxu0 %vm1245_vm0, %v1244_v0 }
 0x353   : > { %1030 = vmatmul.mubr.msk.bf16.gmra.mrb[8].mxu0 %vm650_vm2, %v705_v5 }
 0x416   : > { %v761_v6 = vpop.f32.mrb[0].mxu0 }
 0x417   : > { %v1023_v9 = vpop.f32.mrb[1].mxu0 }
 0x418   : > { %v764_v10 = vpop.f32.mrb[2].mxu0 }
 0x419   : > { %v1024_v11 = vpop.f32.mrb[3].mxu0 }
 0x41e   : > { %v769_v14 = vpop.f32.mrb[4].mxu0 }
 0x41f   : > { %v1027_v15 = vpop.f32.mrb[5].mxu0 }
 0x420   : > { %v772_v16 = vpop.f32.mrb[6].mxu0 }
 0x421   : > { %v1028_v17 = vpop.f32.mrb[7].mxu0 }
 0x426   : > { %v777_v18 = vpop.f32.mrb[8].mxu0 }
 0x427   : > { %1125 = vrcp.f32 %v777_v18  ;;  %v1031_v20 = vpop.f32.mrb[9].mxu0 }
 0x428   : > { %v780_v0 = vpop.f32.mrb[10].mxu0 }
 0x429   : > { %v1032_v21 = vpop.f32.mrb[11].mxu0 }
 0x431   : > { %v1126_v24 = vpop.eup %1125 }
 0x432   : > { %v787_v26 = vrot.slane %v1126_v24, %v786_v22 }
 0x434   : > { %v788_v30 = vmul.f32 %v787_v26, %v761_v6  ;;  %v789_v32 = vmul.f32 %v787_v26, %v764_v10  ;;  %v790_v33 = vmul.f32 %v787_v26, %v769_v14  ;;  %v791_v34 = vmul.f32 %v787_v26, %v772_v16 }
 0x436   : > { %v794_v35 = vmul.f32 %v793_v28, %v788_v30  ;;  %v795_v36 = vmul.f32 %v793_v28, %v789_v32  ;;  %v796_v37 = vmul.f32 %v793_v28, %v790_v33  ;;  %v797_v38 = vmul.f32 %v793_v28, %v791_v34 }
 0x438   : > { %v798_v39 = vadd.f32 %v794_v35, %v1426_v7  ;;  %v799_v40 = vadd.f32 %v795_v36, %v1428_v8  ;;  %v800_v41 = vadd.f32 %v796_v37, %v1436_v12  ;;  %v801_v42 = vadd.f32 %v797_v38, %v1438_v13 }
 0x43a   : > { %802 = vst.msk [vmem:[%s329_s23] sm:$0xff] %vm650_vm2, %v798_v39  ;;  %803 = vst.msk [vmem:[%s329_s23 + $0x8] sm:$0xff] %vm650_vm2, %v799_v40 }
 0x43b   : > { %804 = vst.msk [vmem:[%s329_s23 + $0x10] sm:$0xff] %vm650_vm2, %v800_v41  ;;  %805 = vst.msk [vmem:[%s329_s23 + $0x18] sm:$0xff] %vm650_vm2, %v801_v42 }
 0x43c   : > { %1170 = shalt.err (!%p1167_p4)
}
 0x43d   : > { %s1171_s13 = scalar_lea.hbm %s1537_s0, 512  ;;  %s1175_s21 = scalar_lea.hbm %s1603_s7, 1024 }
 0x43e   : > { %p1172_p7 = scmp.ne.s32.totalorder %s1537_s0, %s1171_s13  ;;  %p1176_p1 = scmp.lt.u32.totalorder %s1537_s0, %s1603_s7 }
 0x43f   : > { %p1177_p3 = scmp.lt.u32.totalorder %s1175_s21, %s1171_s13  ;;  %p1179_p8 = scmp.lt.u32.totalorder %s1171_s13, %s1537_s0 }
 0x440   : > { %p1173_p10 = pnand %p1172_p7, %p1611_p11 }
 0x441   : > { %p1178_p9 = por %p1177_p3, %p1176_p1 }
 0x442   : > { %p1174_p12 = pneg %p1173_p10 }
 0x443   : > { %p1180_p0 = por %p1179_p8, %p1178_p9 }
 0x445   : > { %p1181_p6 = pnand %p1180_p0, %p1174_p12 }
 0x447   : > { %1184 = shalt.err (!%p1181_p6)
}
 0x448   : > { %s1248_s25 = smov 128   ;;  %s1249_s20 = smov 8  }
 0x449   : > { %1035 = dma.vmem_to_hbm [thread:$0]  (%p1611_p11), %s1539_s14, 512, %s1537_s0, %s807_s29, %s1248_s25, %s1248_s25, %s1249_s20  }
 0x44a PF: > { %s836_s9 = sand.u32 1, %s1219_s26   ;;  %p1612_p13 = scmp.ne.s32.totalorder %s1608_s17, 0 }
 0x44b   : > { %p1613_p2 = scmp.ge.s32.totalorder %s1239_s8, 2  ;;  %s837_s22 = scalar_lea.sflag [#allocation5], %s836_s9 }
 0x44d   : > { %p1042_p5 = pnand %p1613_p2, %p1612_p13 }
 0x44f   : > { %1214 = dma.done.wait (!%p1042_p5), %s837_s22, 512  }
 0x450   : > { %1216 = vsyncadd (!%p1042_p5), %s837_s22, 4294966784  ;;  %s24_s8 = sadd.s32 1, %s1239_s8   ;;  %s1614_s26 = smov %s1223_s27 }
 0x451   : > { %p21_p4 = scmp.ge.s32.totalorder %s24_s8, 4   ;;  %s1615_s27 = smov %s1227_s28 }
 0x452   : > { %s1616_s28 = smov %s1349_s16  ;;  %s1617_s29 = smov %s1235_s30 }
 0x453   : > { %s1618_s30 = smov %s1620_s10  ;;  %23 = sbr.rel (!%p21_p4) target bundleno = 8 (0x8), region = 96 }
 0x45a   :  { %842 = vsyncpa [#allocation4], 1 }
 0x45b   :  { %844 = vsyncpa [#allocation4 + $0x1], 1 }
 0x45c   :  { %845 = vsyncpa [#allocation5], 1 }
 0x45d   :  { %847 = vsyncpa [#allocation5 + $0x1], 1 }

</bundles_post_ra>
